<compile_context>
chip_gen: v7x
topology: tpu7x:2x2x1
jax: 0.10.0
libtpu: 0.0.40
codegen_flags: <defaults>
</compile_context>

<pallas_src>
import functools

import jax
import jax.numpy as jnp
from jax.experimental import pallas as pl
from jax.experimental.pallas import tpu as pltpu


def _round_up(x, m):
    return (x + m - 1) // m * m


# ----------------------------- Pallas kernel --------------------------------

def _mlp_kernel(*refs, training: bool, keep_prob: float):
    if training:
        seed_ref, x_ref, w1_ref, b1_ref, w2_ref, b2_ref, o_ref = refs
    else:
        x_ref, w1_ref, b1_ref, w2_ref, b2_ref, o_ref = refs

    # fc1
    h = jnp.dot(x_ref[...], w1_ref[...], preferred_element_type=jnp.float32)
    h = h + b1_ref[...]

    # dropout (PyTorch order: dropout before ReLU). Identity in eval mode.
    if training:
        pltpu.prng_seed(seed_ref[0] + pl.program_id(0))
        bits = pltpu.bitcast(pltpu.prng_random_bits(h.shape), jnp.uint32)
        thresh = jnp.uint32(min(int(keep_prob * 2.0**32), 2**32 - 1))
        h = jnp.where(bits < thresh, h * (1.0 / keep_prob), 0.0)

    # ReLU
    h = jnp.maximum(h, 0.0)

    # fc2
    logits = jnp.dot(h, w2_ref[...], preferred_element_type=jnp.float32)
    logits = logits + b2_ref[...]

    # softmax(dim=1) over the lane-padded class axis; padded columns carry a
    # -1e30 bias so exp(pad - max) underflows to exactly 0.
    m = jnp.max(logits, axis=-1, keepdims=True)
    e = jnp.exp(logits - m)
    o_ref[...] = e / jnp.sum(e, axis=-1, keepdims=True)


# ------------------------------- wrapper -------------------------------------

def mlp_forward(x, params, *, training=False, dropout_p=0.5, seed=0,
                block_rows=256):
    """x: (B, C, H, W) (or any (B, ...) with dims matching dim_in).  Returns
    softmax probabilities of shape (B, dim_out)."""
    b = x.shape[0]
    dim_in = x.shape[1] * x.shape[-2] * x.shape[-1]
    xf = x.astype(jnp.float32).reshape(b, dim_in)      # x.view(-1, C*H*W)

    # PyTorch Linear stores (out_features, in_features); transpose for matmul.
    w1 = params["w1"].T.astype(jnp.float32)            # (dim_in, dim_hidden)
    b1 = params["b1"].reshape(1, -1).astype(jnp.float32)
    w2 = params["w2"].T.astype(jnp.float32)            # (dim_hidden, dim_out)
    b2 = params["b2"].reshape(1, -1).astype(jnp.float32)

    dim_hidden = w1.shape[1]
    dim_out = w2.shape[1]

    # Lane-dense output: pad class axis to a multiple of 128.
    out_p = _round_up(dim_out, 128)
    if out_p != dim_out:
        w2 = jnp.pad(w2, ((0, 0), (0, out_p - dim_out)))
        b2 = jnp.pad(b2, ((0, 0), (0, out_p - dim_out)),
                     constant_values=-1e30)

    # Batch tiling (rows of the fused matmuls).
    tile_b = min(_round_up(b, 8), block_rows)
    bp = _round_up(b, tile_b)
    if bp != b:
        xf = jnp.pad(xf, ((0, bp - b), (0, 0)))
    grid = (bp // tile_b,)

    kernel = functools.partial(_mlp_kernel, training=training,
                               keep_prob=1.0 - dropout_p)

    in_specs = [
        pl.BlockSpec((tile_b, dim_in), lambda i: (i, 0)),       # x rows
        pl.BlockSpec((dim_in, dim_hidden), lambda i: (0, 0)),   # w1 (resident)
        pl.BlockSpec((1, dim_hidden), lambda i: (0, 0)),        # b1
        pl.BlockSpec((dim_hidden, out_p), lambda i: (0, 0)),    # w2 (resident)
        pl.BlockSpec((1, out_p), lambda i: (0, 0)),             # b2
    ]
    args = [xf, w1, b1, w2, b2]
    if training:
        in_specs = [pl.BlockSpec(memory_space=pltpu.MemorySpace.SMEM)] + in_specs
        args = [jnp.asarray([seed], dtype=jnp.int32)] + args

    # VMEM budget: double-buffered x / out tiles + resident weights + slack.
    need = 4 * (2 * tile_b * dim_in            # x tiles (double-buffered)
                + dim_in * dim_hidden + dim_hidden
                + dim_hidden * out_p + out_p
                + 2 * tile_b * out_p           # out tiles (double-buffered)
                + 4 * tile_b * dim_hidden)     # in-kernel intermediates
    vmem_bytes = min(max(2 * need, 4 << 20), 32 << 20)

    out = pl.pallas_call(
        kernel,
        out_shape=jax.ShapeDtypeStruct((bp, out_p), jnp.float32),
        grid=grid,
        in_specs=in_specs,
        out_specs=pl.BlockSpec((tile_b, out_p), lambda i: (i, 0)),
        compiler_params=pltpu.CompilerParams(
            dimension_semantics=("parallel",),
            vmem_limit_bytes=vmem_bytes),
    )(*args)

    return out[:b, :dim_out]


# ------------------------------ params / demo --------------------------------

def init_params(key, dim_in, dim_hidden, dim_out):
    k1, k2, k3, k4 = jax.random.split(key, 4)
    lim1 = 1.0 / float(dim_in) ** 0.5
    lim2 = 1.0 / float(dim_hidden) ** 0.5
    return {
        # PyTorch Linear layout: (out_features, in_features)
        "w1": jax.random.uniform(k1, (dim_hidden, dim_in), jnp.float32, -lim1, lim1),
        "b1": jax.random.uniform(k2, (dim_hidden,), jnp.float32, -lim1, lim1),
        "w2": jax.random.uniform(k3, (dim_out, dim_hidden), jnp.float32, -lim2, lim2),
        "b2": jax.random.uniform(k4, (dim_out,), jnp.float32, -lim2, lim2),
    }


if __name__ == "__main__":
    key = jax.random.PRNGKey(0)
    k_param, k_x = jax.random.split(key)

    B, C, H, W = 2, 4, 16, 16
    DIM_IN = C * H * W          # 1024
    DIM_HIDDEN = 32
    DIM_OUT = 10

    params = init_params(k_param, DIM_IN, DIM_HIDDEN, DIM_OUT)
    x = jax.random.normal(k_x, (B, C, H, W), dtype=jnp.float32)

    fwd = jax.jit(functools.partial(mlp_forward, training=False))
    probs = fwd(x, params)
    jax.block_until_ready(probs)

    # pure-JAX reference (eval mode: dropout = identity)
    xf = x.reshape(B, DIM_IN)
    h_ref = jnp.maximum(xf @ params["w1"].T + params["b1"], 0.0)
    logits_ref = h_ref @ params["w2"].T + params["b2"]
    ref = jax.nn.softmax(logits_ref, axis=1)

    assert probs.shape == (B, DIM_OUT)
    assert jnp.allclose(jnp.sum(probs, axis=1), 1.0, atol=1e-5)
    assert jnp.allclose(probs, ref, atol=2e-4, rtol=2e-4)

    print("KERNEL_OK")
</pallas_src>

<mosaic_0001>
module attributes {stable_mosaic.version = 11 : i64} {
  func.func @_mlp_kernel(%arg0: i32, %arg1: memref<8x1024xf32, #tpu.memory_space<vmem>>, %arg2: memref<1024x32xf32, #tpu.memory_space<vmem>>, %arg3: memref<1x32xf32, #tpu.memory_space<vmem>>, %arg4: memref<32x128xf32, #tpu.memory_space<vmem>>, %arg5: memref<1x128xf32, #tpu.memory_space<vmem>>, %arg6: memref<8x128xf32, #tpu.memory_space<vmem>>) attributes {dimension_semantics = [#tpu.dimension_semantics<parallel>], iteration_bounds = array<i64: 1>, scalar_prefetch = 0 : i64, scratch_operands = 0 : i64, tpu.core_type = #tpu.core_type<tc>, window_params = [{transform_indices = @transform_0, window_bounds = array<i64: 8, 1024>}, {pipeline_mode = #tpu.pipeline_mode<synchronous>, transform_indices = @transform_1, window_bounds = array<i64: 1024, 32>}, {pipeline_mode = #tpu.pipeline_mode<synchronous>, transform_indices = @transform_2, window_bounds = array<i64: 1, 32>}, {pipeline_mode = #tpu.pipeline_mode<synchronous>, transform_indices = @transform_3, window_bounds = array<i64: 32, 128>}, {pipeline_mode = #tpu.pipeline_mode<synchronous>, transform_indices = @transform_4, window_bounds = array<i64: 1, 128>}, {transform_indices = @transform_5, window_bounds = array<i64: 8, 128>}]} {
    %c0 = arith.constant 0 : index
    %c0_0 = arith.constant 0 : index
    %0 = vector.load %arg1[%c0, %c0_0] : memref<8x1024xf32, #tpu.memory_space<vmem>>, vector<8x1024xf32>
    %c0_1 = arith.constant 0 : index
    %c0_2 = arith.constant 0 : index
    %1 = vector.load %arg2[%c0_1, %c0_2] : memref<1024x32xf32, #tpu.memory_space<vmem>>, vector<1024x32xf32>
    %cst = arith.constant dense<0.000000e+00> : vector<8x32xf32>
    %2 = tpu.matmul %0, %1, %cst {dimension_numbers = #tpu.dot_dimension_numbers<[1], [0], [0], [1], [0, 0, 1, 1], [], []>} : vector<8x1024xf32>, vector<1024x32xf32>, vector<8x32xf32> -> vector<8x32xf32>
    %c0_3 = arith.constant 0 : index
    %c0_4 = arith.constant 0 : index
    %3 = vector.load %arg3[%c0_3, %c0_4] : memref<1x32xf32, #tpu.memory_space<vmem>>, vector<1x32xf32>
    %4 = vector.broadcast %3 : vector<1x32xf32> to vector<8x32xf32>
    %5 = arith.addf %2, %4 : vector<8x32xf32>
    %cst_5 = arith.constant 0.000000e+00 : f32
    %6 = vector.broadcast %cst_5 : f32 to vector<8x32xf32>
    %7 = arith.maximumf %5, %6 : vector<8x32xf32>
    %c0_6 = arith.constant 0 : index
    %c0_7 = arith.constant 0 : index
    %8 = vector.load %arg4[%c0_6, %c0_7] : memref<32x128xf32, #tpu.memory_space<vmem>>, vector<32x128xf32>
    %cst_8 = arith.constant dense<0.000000e+00> : vector<8x128xf32>
    %9 = tpu.matmul %7, %8, %cst_8 {dimension_numbers = #tpu.dot_dimension_numbers<[1], [0], [0], [1], [0, 0, 1, 1], [], []>} : vector<8x32xf32>, vector<32x128xf32>, vector<8x128xf32> -> vector<8x128xf32>
    %c0_9 = arith.constant 0 : index
    %c0_10 = arith.constant 0 : index
    %10 = vector.load %arg5[%c0_9, %c0_10] : memref<1x128xf32, #tpu.memory_space<vmem>>, vector<1x128xf32>
    %11 = vector.broadcast %10 : vector<1x128xf32> to vector<8x128xf32>
    %12 = arith.addf %9, %11 : vector<8x128xf32>
    %cst_11 = arith.constant dense<0xFF800000> : vector<8xf32>
    %13 = vector.multi_reduction <maximumf>, %12, %cst_11 [1] : vector<8x128xf32> to vector<8xf32>
    %14 = vector.shape_cast %13 : vector<8xf32> to vector<8x1xf32>
    %15 = vector.broadcast %14 : vector<8x1xf32> to vector<8x128xf32>
    %16 = arith.subf %12, %15 : vector<8x128xf32>
    %17 = math.exp %16 : vector<8x128xf32>
    %cst_12 = arith.constant dense<0.000000e+00> : vector<8xf32>
    %18 = vector.multi_reduction <add>, %17, %cst_12 [1] : vector<8x128xf32> to vector<8xf32>
    %19 = vector.shape_cast %18 : vector<8xf32> to vector<8x1xf32>
    %20 = vector.broadcast %19 : vector<8x1xf32> to vector<8x128xf32>
    %21 = arith.divf %17, %20 : vector<8x128xf32>
    %c0_13 = arith.constant 0 : index
    %c0_14 = arith.constant 0 : index
    %22 = vector.load %arg6[%c0_13, %c0_14] : memref<8x128xf32, #tpu.memory_space<vmem>>, vector<8x128xf32>
    tpu.vector_store %arg6[%c0_13, %c0_14], %21 {strides = array<i32>} : memref<8x128xf32, #tpu.memory_space<vmem>>, vector<8x128xf32>,
    return
  }
  func.func @transform_0(%arg0: i32) -> (i32, i32) {
    %c0_i32 = arith.constant 0 : i32
    %c0_i32_0 = arith.constant 0 : i32
    return %arg0, %c0_i32 : i32, i32
  }
  func.func @transform_1(%arg0: i32) -> (i32, i32) {
    %c0_i32 = arith.constant 0 : i32
    %c0_i32_0 = arith.constant 0 : i32
    %c0_i32_1 = arith.constant 0 : i32
    return %c0_i32, %c0_i32_0 : i32, i32
  }
  func.func @transform_2(%arg0: i32) -> (i32, i32) {
    %c0_i32 = arith.constant 0 : i32
    %c0_i32_0 = arith.constant 0 : i32
    %c0_i32_1 = arith.constant 0 : i32
    return %c0_i32, %c0_i32_0 : i32, i32
  }
  func.func @transform_3(%arg0: i32) -> (i32, i32) {
    %c0_i32 = arith.constant 0 : i32
    %c0_i32_0 = arith.constant 0 : i32
    %c0_i32_1 = arith.constant 0 : i32
    return %c0_i32, %c0_i32_0 : i32, i32
  }
  func.func @transform_4(%arg0: i32) -> (i32, i32) {
    %c0_i32 = arith.constant 0 : i32
    %c0_i32_0 = arith.constant 0 : i32
    %c0_i32_1 = arith.constant 0 : i32
    return %c0_i32, %c0_i32_0 : i32, i32
  }
  func.func @transform_5(%arg0: i32) -> (i32, i32) {
    %c0_i32 = arith.constant 0 : i32
    %c0_i32_0 = arith.constant 0 : i32
    return %arg0, %c0_i32 : i32, i32
  }
}

</mosaic_0001>

<bundles_post_ra>
// kernel: mlp_forward.1
= control target key start
LH: loop header
LB: loop body
LE: loop exit
PB: predicated region body
PF: predicated region fallthrough
CT: control target
= control target key end

     0   :  { %vm844_vm0 = vmmov 0   ;;  %vm455_vm1 = vcmask 261120   ;;  %s1305_s1 = inlined_call_operand.vmem [shape: f32[1024,32], index: 1, kind: input, shape index: {}]   ;;  %s1306_s0 = inlined_call_operand.vmem [shape: f32[8,1024], index: 0, kind: input, shape index: {}]   ;;  %s1307_s3 = inlined_call_operand.vmem [shape: f32[32,128], index: 3, kind: input, shape index: {}]   ;;  %s1308_s2 = inlined_call_operand.vmem [shape: f32[1,32], index: 2, kind: input, shape index: {}]   ;;  %s1309_s4 = inlined_call_operand.vmem [shape: f32[1,128], index: 4, kind: input, shape index: {}]   ;;  %s1310_s5 = inlined_call_operand.vmem [shape: f32[8,128], index: 5, kind: output, shape index: {}]  }
   0x1   :  { %v44_v0 = vld [vmem:[%s1305_s1 + $0x80] sm:$0xff]  ;;  %v45_v1 = vld [vmem:[%s1305_s1 + $0x88] sm:$0xff]  ;;  %v46_v11 = vld [vmem:[%s1305_s1 + $0x90] sm:$0xff] }
   0x2   :  { %v28_v2 = vld [vmem:[%s1305_s1] sm:$0xff]  ;;  %v702_v3 = vpack.c.bf16 %v45_v1, %v44_v0  ;;  %v29_v4 = vld [vmem:[%s1305_s1 + $0x8] sm:$0xff]  ;;  %v47_v13 = vld [vmem:[%s1305_s1 + $0x98] sm:$0xff] }
   0x3   :  { %v76_v5 = vld [vmem:[%s1305_s1 + $0x180] sm:$0xff]  ;;  %v77_v6 = vld [vmem:[%s1305_s1 + $0x188] sm:$0xff]  ;;  %v704_v7 = vpack.c.bf16 %v29_v4, %v28_v2  ;;  %v30_v14 = vld [vmem:[%s1305_s1 + $0x10] sm:$0xff]  ;;  %v706_v16 = vpack.c.bf16 %v47_v13, %v46_v11 }
   0x4   :  { %v734_v8 = vpack.c.bf16 %v77_v6, %v76_v5  ;;  %v60_v9 = vld [vmem:[%s1305_s1 + $0x100] sm:$0xff]  ;;  %v61_v10 = vld [vmem:[%s1305_s1 + $0x108] sm:$0xff]  ;;  %703 = vmatprep.subr.bf16.mxu0 %v702_v3  ;;  %v31_v15 = vld [vmem:[%s1305_s1 + $0x18] sm:$0xff] }
   0x5   :  { %v736_v12 = vpack.c.bf16 %v61_v10, %v60_v9  ;;  %705 = vmatpush3.bf16.msra.mxu0 %v704_v7  ;;  %v708_v17 = vpack.c.bf16 %v31_v15, %v30_v14  ;;  %v78_v18 = vld [vmem:[%s1305_s1 + $0x190] sm:$0xff]  ;;  %v79_v19 = vld [vmem:[%s1305_s1 + $0x198] sm:$0xff]  ;;  %v48_v23 = vld [vmem:[%s1305_s1 + $0xa0] sm:$0xff] }
   0x6   :  { %735 = vmatprep.subr.bf16.mxu1 %v734_v8  ;;  %v62_v20 = vld [vmem:[%s1305_s1 + $0x110] sm:$0xff]  ;;  %v738_v21 = vpack.c.bf16 %v79_v19, %v78_v18  ;;  %v63_v22 = vld [vmem:[%s1305_s1 + $0x118] sm:$0xff]  ;;  %v49_v24 = vld [vmem:[%s1305_s1 + $0xa8] sm:$0xff]  ;;  %707 = vmatprep.subr.bf16.mxu0 %v706_v16 }
   0x7   :  { %737 = vmatpush3.bf16.msra.mxu1 %v736_v12  ;;  %v740_v25 = vpack.c.bf16 %v63_v22, %v62_v20  ;;  %v710_v26 = vpack.c.bf16 %v49_v24, %v48_v23  ;;  %v32_v27 = vld [vmem:[%s1305_s1 + $0x20] sm:$0xff]  ;;  %v33_v28 = vld [vmem:[%s1305_s1 + $0x28] sm:$0xff]  ;;  %v50_v35 = vld [vmem:[%s1305_s1 + $0xb0] sm:$0xff] }
   0x8   :  { %v80_v29 = vld [vmem:[%s1305_s1 + $0x1a0] sm:$0xff]  ;;  %739 = vmatprep.subr.bf16.mxu1 %v738_v21  ;;  %v81_v30 = vld [vmem:[%s1305_s1 + $0x1a8] sm:$0xff]  ;;  %v712_v33 = vpack.c.bf16 %v33_v28, %v32_v27  ;;  %v51_v36 = vld [vmem:[%s1305_s1 + $0xb8] sm:$0xff] }
   0x9   :  { %v64_v31 = vld [vmem:[%s1305_s1 + $0x120] sm:$0xff]  ;;  %v65_v32 = vld [vmem:[%s1305_s1 + $0x128] sm:$0xff]  ;;  %709 = vmatpush3.bf16.msra.mxu0 %v708_v17  ;;  %v742_v34 = vpack.c.bf16 %v81_v30, %v80_v29  ;;  %v34_v37 = vld [vmem:[%s1305_s1 + $0x30] sm:$0xff]  ;;  %v714_v39 = vpack.c.bf16 %v51_v36, %v50_v35 }
   0xa   :  { %711 = vmatprep.subr.bf16.mxu0 %v710_v26  ;;  %v744_v38 = vpack.c.bf16 %v65_v32, %v64_v31  ;;  %v35_v40 = vld [vmem:[%s1305_s1 + $0x38] sm:$0xff]  ;;  %v82_v41 = vld [vmem:[%s1305_s1 + $0x1b0] sm:$0xff]  ;;  %v52_v46 = vld [vmem:[%s1305_s1 + $0xc0] sm:$0xff] }
   0xb   :  { %741 = vmatpush3.bf16.msra.mxu1 %v740_v25  ;;  %v83_v42 = vld [vmem:[%s1305_s1 + $0x1b8] sm:$0xff]  ;;  %v66_v44 = vld [vmem:[%s1305_s1 + $0x130] sm:$0xff]  ;;  %v53_v47 = vld [vmem:[%s1305_s1 + $0xc8] sm:$0xff]  ;;  %v716_v48 = vpack.c.bf16 %v35_v40, %v34_v37 }
   0xc   :  { %743 = vmatprep.subr.bf16.mxu1 %v742_v34  ;;  %v746_v43 = vpack.c.bf16 %v83_v42, %v82_v41  ;;  %v67_v45 = vld [vmem:[%s1305_s1 + $0x138] sm:$0xff]  ;;  %v84_v49 = vld [vmem:[%s1305_s1 + $0x1c0] sm:$0xff]  ;;  %v85_v50 = vld [vmem:[%s1305_s1 + $0x1c8] sm:$0xff]  ;;  %v718_v52 = vpack.c.bf16 %v53_v47, %v52_v46 }
   0xd   :  { %713 = vmatpush3.bf16.msra.mxu0 %v712_v33  ;;  %v748_v51 = vpack.c.bf16 %v67_v45, %v66_v44  ;;  %v36_v53 = vld [vmem:[%s1305_s1 + $0x40] sm:$0xff]  ;;  %v37_v54 = vld [vmem:[%s1305_s1 + $0x48] sm:$0xff]  ;;  %v750_v56 = vpack.c.bf16 %v85_v50, %v84_v49  ;;  %v54_v58 = vld [vmem:[%s1305_s1 + $0xd0] sm:$0xff] }
   0xe   :  { %715 = vmatprep.subr.bf16.mxu0 %v714_v39  ;;  %v68_v55 = vld [vmem:[%s1305_s1 + $0x140] sm:$0xff]  ;;  %v69_v57 = vld [vmem:[%s1305_s1 + $0x148] sm:$0xff]  ;;  %v55_v59 = vld [vmem:[%s1305_s1 + $0xd8] sm:$0xff]  ;;  %v720_v62 = vpack.c.bf16 %v37_v54, %v36_v53 }
   0xf   :  { %745 = vmatpush3.bf16.msra.mxu1 %v744_v38  ;;  %v86_v60 = vld [vmem:[%s1305_s1 + $0x1d0] sm:$0xff]  ;;  %v87_v61 = vld [vmem:[%s1305_s1 + $0x1d8] sm:$0xff]  ;;  %v752_v63 = vpack.c.bf16 %v69_v57, %v68_v55  ;;  %v722_v0 = vpack.c.bf16 %v55_v59, %v54_v58  ;;  %v56_v6 = vld [vmem:[%s1305_s1 + $0xe0] sm:$0xff] }
  0x10   :  { %747 = vmatprep.subr.bf16.mxu1 %v746_v43  ;;  %v38_v1 = vld [vmem:[%s1305_s1 + $0x50] sm:$0xff]  ;;  %v39_v2 = vld [vmem:[%s1305_s1 + $0x58] sm:$0xff]  ;;  %v754_v4 = vpack.c.bf16 %v87_v61, %v86_v60  ;;  %v57_v7 = vld [vmem:[%s1305_s1 + $0xe8] sm:$0xff] }
  0x11   :  { %717 = vmatpush3.bf16.msra.mxu0 %v716_v48  ;;  %v70_v3 = vld [vmem:[%s1305_s1 + $0x150] sm:$0xff]  ;;  %v71_v5 = vld [vmem:[%s1305_s1 + $0x158] sm:$0xff]  ;;  %v88_v8 = vld [vmem:[%s1305_s1 + $0x1e0] sm:$0xff]  ;;  %v724_v10 = vpack.c.bf16 %v39_v2, %v38_v1  ;;  %v726_v14 = vpack.c.bf16 %v57_v7, %v56_v6 }
  0x12   :  { %719 = vmatprep.subr.bf16.mxu0 %v718_v52  ;;  %v89_v9 = vld [vmem:[%s1305_s1 + $0x1e8] sm:$0xff]  ;;  %v40_v11 = vld [vmem:[%s1305_s1 + $0x60] sm:$0xff]  ;;  %v756_v13 = vpack.c.bf16 %v71_v5, %v70_v3  ;;  %v58_v19 = vld [vmem:[%s1305_s1 + $0xf0] sm:$0xff] }
  0x13   :  { %749 = vmatpush3.bf16.msra.mxu1 %v748_v51  ;;  %v41_v12 = vld [vmem:[%s1305_s1 + $0x68] sm:$0xff]  ;;  %v72_v15 = vld [vmem:[%s1305_s1 + $0x160] sm:$0xff]  ;;  %v758_v18 = vpack.c.bf16 %v89_v9, %v88_v8  ;;  %v59_v20 = vld [vmem:[%s1305_s1 + $0xf8] sm:$0xff] }
  0x14   :  { %751 = vmatprep.subr.bf16.mxu1 %v750_v56  ;;  %v73_v16 = vld [vmem:[%s1305_s1 + $0x168] sm:$0xff]  ;;  %v23_v21 = vld [vmem:[%s1306_s0 + $0x18] sm:$0xff]  ;;  %v90_v22 = vld [vmem:[%s1305_s1 + $0x1f0] sm:$0xff]  ;;  %v728_v24 = vpack.c.bf16 %v41_v12, %v40_v11  ;;  %v730_v26 = vpack.c.bf16 %v59_v20, %v58_v19 }
  0x15   :  { %721 = vmatpush3.bf16.msra.mxu0 %v720_v62  ;;  %v21_v17 = vld [vmem:[%s1306_s0 + $0x8] sm:$0xff]  ;;  %v91_v23 = vld [vmem:[%s1305_s1 + $0x1f8] sm:$0xff]  ;;  %297 = vmatprep.mubr.f32.mxu1 %v23_v21  ;;  %v760_v25 = vpack.c.bf16 %v73_v16, %v72_v15  ;;  %v42_v27 = vld [vmem:[%s1305_s1 + $0x70] sm:$0xff] }
  0x16   :  { %723 = vmatprep.subr.bf16.mxu0 %v722_v0  ;;  %227 = vmatprep.mubr.f32.mxu0 %v21_v17  ;;  %v43_v28 = vld [vmem:[%s1305_s1 + $0x78] sm:$0xff]  ;;  %v74_v29 = vld [vmem:[%s1305_s1 + $0x170] sm:$0xff]  ;;  %v762_v30 = vpack.c.bf16 %v91_v23, %v90_v22  ;;  %v108_v32 = vld [vmem:[%s1305_s1 + $0x280] sm:$0xff] }
  0x17   :  { %753 = vmatpush3.bf16.msra.mxu1 %v752_v63  ;;  %v75_v31 = vld [vmem:[%s1305_s1 + $0x178] sm:$0xff]  ;;  %v109_v33 = vld [vmem:[%s1305_s1 + $0x288] sm:$0xff]  ;;  %v140_v34 = vld [vmem:[%s1305_s1 + $0x380] sm:$0xff]  ;;  %v732_v36 = vpack.c.bf16 %v43_v28, %v42_v27 }
  0x18   :  { %755 = vmatprep.subr.bf16.mxu1 %v754_v4  ;;  %v141_v35 = vld [vmem:[%s1305_s1 + $0x388] sm:$0xff]  ;;  %v764_v37 = vpack.c.bf16 %v75_v31, %v74_v29  ;;  %v766_v38 = vpack.c.bf16 %v109_v33, %v108_v32  ;;  %v92_v39 = vld [vmem:[%s1305_s1 + $0x200] sm:$0xff]  ;;  %v110_v44 = vld [vmem:[%s1305_s1 + $0x290] sm:$0xff] }
  0x19   :  { %725 = vmatpush3.bf16.msra.mxu0 %v724_v10  ;;  %v93_v40 = vld [vmem:[%s1305_s1 + $0x208] sm:$0xff]  ;;  %v124_v41 = vld [vmem:[%s1305_s1 + $0x300] sm:$0xff]  ;;  %v798_v42 = vpack.c.bf16 %v141_v35, %v140_v34  ;;  %v111_v45 = vld [vmem:[%s1305_s1 + $0x298] sm:$0xff] }
  0x1a   :  { %727 = vmatprep.subr.bf16.mxu0 %v726_v14  ;;  %v125_v43 = vld [vmem:[%s1305_s1 + $0x308] sm:$0xff]  ;;  %v142_v46 = vld [vmem:[%s1305_s1 + $0x390] sm:$0xff]  ;;  %v143_v47 = vld [vmem:[%s1305_s1 + $0x398] sm:$0xff]  ;;  %v768_v49 = vpack.c.bf16 %v93_v40, %v92_v39  ;;  %v770_v52 = vpack.c.bf16 %v111_v45, %v110_v44 }
  0x1b   :  { %757 = vmatpush3.bf16.msra.mxu1 %v756_v13  ;;  %v20_v48 = vld [vmem:[%s1306_s0] sm:$0xff]  ;;  %v22_v50 = vld [vmem:[%s1306_s0 + $0x10] sm:$0xff]  ;;  %v800_v51 = vpack.c.bf16 %v125_v43, %v124_v41  ;;  %v95_v54 = vld [vmem:[%s1305_s1 + $0x218] sm:$0xff]  ;;  %v802_v56 = vpack.c.bf16 %v143_v47, %v142_v46 }
  0x1c   :  { %759 = vmatprep.subr.bf16.mxu1 %v758_v18  ;;  %v94_v53 = vld [vmem:[%s1305_s1 + $0x210] sm:$0xff]  ;;  %v127_v57 = vld [vmem:[%s1305_s1 + $0x318] sm:$0xff]  ;;  %v112_v58 = vld [vmem:[%s1305_s1 + $0x2a0] sm:$0xff] }
  0x1d   :  { %729 = vmatpush3.bf16.msra.mxu0 %v728_v24  ;;  %v126_v55 = vld [vmem:[%s1305_s1 + $0x310] sm:$0xff]  ;;  %v113_v59 = vld [vmem:[%s1305_s1 + $0x2a8] sm:$0xff]  ;;  %v144_v60 = vld [vmem:[%s1305_s1 + $0x3a0] sm:$0xff]  ;;  %v772_v62 = vpack.c.bf16 %v95_v54, %v94_v53 }
  0x1e   :  { %731 = vmatprep.subr.bf16.mxu0 %v730_v26  ;;  %v145_v61 = vld [vmem:[%s1305_s1 + $0x3a8] sm:$0xff]  ;;  %v804_v63 = vpack.c.bf16 %v127_v57, %v126_v55  ;;  %v774_v0 = vpack.c.bf16 %v113_v59, %v112_v58  ;;  %v96_v1 = vld [vmem:[%s1305_s1 + $0x220] sm:$0xff]  ;;  %v114_v6 = vld [vmem:[%s1305_s1 + $0x2b0] sm:$0xff] }
  0x1f   :  { %761 = vmatpush3.bf16.msra.mxu1 %v760_v25  ;;  %v97_v2 = vld [vmem:[%s1305_s1 + $0x228] sm:$0xff]  ;;  %v128_v3 = vld [vmem:[%s1305_s1 + $0x320] sm:$0xff]  ;;  %v806_v4 = vpack.c.bf16 %v145_v61, %v144_v60  ;;  %v115_v7 = vld [vmem:[%s1305_s1 + $0x2b8] sm:$0xff] }
  0x20   :  { %763 = vmatprep.subr.bf16.mxu1 %v762_v30  ;;  %v129_v5 = vld [vmem:[%s1305_s1 + $0x328] sm:$0xff]  ;;  %v146_v8 = vld [vmem:[%s1305_s1 + $0x3b0] sm:$0xff]  ;;  %v147_v9 = vld [vmem:[%s1305_s1 + $0x3b8] sm:$0xff]  ;;  %v776_v10 = vpack.c.bf16 %v97_v2, %v96_v1  ;;  %v778_v12 = vpack.c.bf16 %v115_v7, %v114_v6 }
  0x21   :  { %733 = vmatpush3.bf16.msra.mxu0 %v732_v36  ;;  %v808_v11 = vpack.c.bf16 %v129_v5, %v128_v3  ;;  %v98_v13 = vld [vmem:[%s1305_s1 + $0x230] sm:$0xff]  ;;  %v99_v14 = vld [vmem:[%s1305_s1 + $0x238] sm:$0xff]  ;;  %v810_v16 = vpack.c.bf16 %v147_v9, %v146_v8  ;;  %v116_v18 = vld [vmem:[%s1305_s1 + $0x2c0] sm:$0xff] }
  0x22   :  { %767 = vmatprep.subr.bf16.mxu0 %v766_v38  ;;  %v130_v15 = vld [vmem:[%s1305_s1 + $0x330] sm:$0xff]  ;;  %v131_v17 = vld [vmem:[%s1305_s1 + $0x338] sm:$0xff]  ;;  %v117_v19 = vld [vmem:[%s1305_s1 + $0x2c8] sm:$0xff]  ;;  %v780_v22 = vpack.c.bf16 %v99_v14, %v98_v13 }
  0x23   :  { %765 = vmatpush3.bf16.msra.mxu1 %v764_v37  ;;  %v148_v20 = vld [vmem:[%s1305_s1 + $0x3c0] sm:$0xff]  ;;  %v149_v21 = vld [vmem:[%s1305_s1 + $0x3c8] sm:$0xff]  ;;  %v27_v24 = vld [vmem:[%s1306_s0 + $0x38] sm:$0xff]  ;;  %v812_v25 = vpack.c.bf16 %v131_v17, %v130_v15  ;;  %v782_v26 = vpack.c.bf16 %v117_v19, %v116_v18  ;;  %v845_v15 = vmov 0.0  }
  0x24   :  { %799 = vmatprep.subr.bf16.mxu1 %v798_v42  ;;  %228 = vmatmul.mubr.f32.vlgmr.msra.gmra.mrb[0].mxu0 %v20_v48  ;;  %v25_v23 = vld [vmem:[%s1306_s0 + $0x28] sm:$0xff]  ;;  %v100_v27 = vld [vmem:[%s1305_s1 + $0x240] sm:$0xff]  ;;  %v814_v30 = vpack.c.bf16 %v149_v21, %v148_v20  ;;  %v118_v32 = vld [vmem:[%s1305_s1 + $0x2d0] sm:$0xff] }
  0x25   :  { %769 = vmatpush3.bf16.msra.mxu0 %v768_v49  ;;  %v101_v28 = vld [vmem:[%s1305_s1 + $0x248] sm:$0xff]  ;;  %v132_v29 = vld [vmem:[%s1305_s1 + $0x340] sm:$0xff]  ;;  %v119_v33 = vld [vmem:[%s1305_s1 + $0x2d8] sm:$0xff]  ;;  %367 = vmatprep.mubr.f32.mxu0 %v25_v23 }
  0x26   :  { %298 = vmatmul.mubr.f32.vlgmr.msra.gmra.mrb[0].mxu1 %v22_v50  ;;  %771 = vmatprep.subr.bf16.mxu0 %v770_v52  ;;  %v133_v31 = vld [vmem:[%s1305_s1 + $0x348] sm:$0xff]  ;;  %v150_v34 = vld [vmem:[%s1305_s1 + $0x3d0] sm:$0xff]  ;;  %v151_v35 = vld [vmem:[%s1305_s1 + $0x3d8] sm:$0xff]  ;;  %v784_v36 = vpack.c.bf16 %v101_v28, %v100_v27  ;;  %v786_v38 = vpack.c.bf16 %v119_v33, %v118_v32 }
  0x27   :  { %801 = vmatpush3.bf16.msra.mxu1 %v800_v51  ;;  %437 = vmatprep.mubr.f32.mxu1 %v27_v24  ;;  %v816_v37 = vpack.c.bf16 %v133_v31, %v132_v29  ;;  %v102_v39 = vld [vmem:[%s1305_s1 + $0x250] sm:$0xff]  ;;  %v103_v40 = vld [vmem:[%s1305_s1 + $0x258] sm:$0xff]  ;;  %v818_v42 = vpack.c.bf16 %v151_v35, %v150_v34  ;;  %v120_v44 = vld [vmem:[%s1305_s1 + $0x2e0] sm:$0xff] }
  0x28   :  { %803 = vmatprep.subr.bf16.mxu1 %v802_v56  ;;  %v134_v41 = vld [vmem:[%s1305_s1 + $0x350] sm:$0xff]  ;;  %v135_v43 = vld [vmem:[%s1305_s1 + $0x358] sm:$0xff]  ;;  %v121_v45 = vld [vmem:[%s1305_s1 + $0x2e8] sm:$0xff]  ;;  %v788_v48 = vpack.c.bf16 %v103_v40, %v102_v39 }
  0x29   :  { %773 = vmatpush3.bf16.msra.mxu0 %v772_v62  ;;  %v152_v46 = vld [vmem:[%s1305_s1 + $0x3e0] sm:$0xff]  ;;  %v153_v47 = vld [vmem:[%s1305_s1 + $0x3e8] sm:$0xff]  ;;  %v820_v49 = vpack.c.bf16 %v135_v43, %v134_v41  ;;  %v790_v50 = vpack.c.bf16 %v121_v45, %v120_v44  ;;  %v122_v56 = vld [vmem:[%s1305_s1 + $0x2f0] sm:$0xff] }
  0x2a   :  { %775 = vmatprep.subr.bf16.mxu0 %v774_v0  ;;  %v104_v51 = vld [vmem:[%s1305_s1 + $0x260] sm:$0xff]  ;;  %v105_v52 = vld [vmem:[%s1305_s1 + $0x268] sm:$0xff]  ;;  %v822_v54 = vpack.c.bf16 %v153_v47, %v152_v46  ;;  %v123_v57 = vld [vmem:[%s1305_s1 + $0x2f8] sm:$0xff] }
  0x2b   :  { %805 = vmatpush3.bf16.msra.mxu1 %v804_v63  ;;  %v136_v53 = vld [vmem:[%s1305_s1 + $0x360] sm:$0xff]  ;;  %v137_v55 = vld [vmem:[%s1305_s1 + $0x368] sm:$0xff]  ;;  %v154_v58 = vld [vmem:[%s1305_s1 + $0x3f0] sm:$0xff]  ;;  %v792_v60 = vpack.c.bf16 %v105_v52, %v104_v51  ;;  %v794_v62 = vpack.c.bf16 %v123_v57, %v122_v56 }
  0x2c   :  { %807 = vmatprep.subr.bf16.mxu1 %v806_v4  ;;  %v155_v59 = vld [vmem:[%s1305_s1 + $0x3f8] sm:$0xff]  ;;  %v824_v61 = vpack.c.bf16 %v137_v55, %v136_v53  ;;  %v106_v63 = vld [vmem:[%s1305_s1 + $0x270] sm:$0xff]  ;;  %v24_v6 = vld [vmem:[%s1306_s0 + $0x20] sm:$0xff] }
  0x2d   :  { %777 = vmatpush3.bf16.msra.mxu0 %v776_v10  ;;  %v107_v0 = vld [vmem:[%s1305_s1 + $0x278] sm:$0xff]  ;;  %v826_v1 = vpack.c.bf16 %v155_v59, %v154_v58  ;;  %v138_v2 = vld [vmem:[%s1305_s1 + $0x370] sm:$0xff]  ;;  %v444_v8 = vld [vmem:[%s1307_s3] sm:$0xff] }
  0x2e   :  { %779 = vmatprep.subr.bf16.mxu0 %v778_v12  ;;  %v139_v3 = vld [vmem:[%s1305_s1 + $0x378] sm:$0xff]  ;;  %v796_v4 = vpack.c.bf16 %v107_v0, %v106_v63  ;;  %v26_v7 = vld [vmem:[%s1306_s0 + $0x30] sm:$0xff]  ;;  %v445_v9 = vld [vmem:[%s1307_s3 + $0x8] sm:$0xff] }
  0x2f   :  { %809 = vmatpush3.bf16.msra.mxu1 %v808_v11  ;;  %v828_v5 = vpack.c.bf16 %v139_v3, %v138_v2  ;;  %v831_v10 = vpack.c.bf16 %v445_v9, %v444_v8  ;;  %v843_v11 = vmov 0.0|0.0   ;;  %v446_v12 = vld [vmem:[%s1307_s3 + $0x10] sm:$0xff]  ;;  %v447_v13 = vld [vmem:[%s1307_s3 + $0x18] sm:$0xff]  ;;  %v543_v17 = vld [vmem:[%s1308_s2] ss:$0 sm:$0xff] }
  0x30   :  { %811 = vmatprep.subr.bf16.mxu1 %v810_v16  ;;  %v834_v14 = vpack.c.bf16 %v447_v13, %v446_v12  ;;  %v544_v34 = vld [vmem:[%s1309_s4] ss:$0 sm:$0xff] }
  0x31   :  { %781 = vmatpush3.bf16.msra.mxu0 %v780_v22 }
  0x32   :  { %783 = vmatprep.subr.bf16.mxu0 %v782_v26 }
  0x33   :  { %813 = vmatpush3.bf16.msra.mxu1 %v812_v25 }
  0x34   :  { %815 = vmatprep.subr.bf16.mxu1 %v814_v30 }
  0x35   :  { %785 = vmatpush3.bf16.msra.mxu0 %v784_v36 }
  0x36   :  { %787 = vmatprep.subr.bf16.mxu0 %v786_v38 }
  0x37   :  { %817 = vmatpush3.bf16.msra.mxu1 %v816_v37 }
  0x38   :  { %819 = vmatprep.subr.bf16.mxu1 %v818_v42 }
  0x39   :  { %789 = vmatpush3.bf16.msra.mxu0 %v788_v48 }
  0x3a   :  { %791 = vmatprep.subr.bf16.mxu0 %v790_v50 }
  0x3b   :  { %821 = vmatpush3.bf16.msra.mxu1 %v820_v49 }
  0x3c   :  { %823 = vmatprep.subr.bf16.mxu1 %v822_v54 }
  0x3d   :  { %793 = vmatpush3.bf16.msra.mxu0 %v792_v60 }
  0x3e   :  { %795 = vmatprep.subr.bf16.mxu0 %v794_v62 }
  0x3f   :  { %825 = vmatpush3.bf16.msra.mxu1 %v824_v61 }
  0x40   :  { %827 = vmatprep.subr.bf16.mxu1 %v826_v1 }
  0x41   :  { %797 = vmatpush3.bf16.msra.mxu0 %v796_v4 }
  0x42   :  { %830 = vmatprep.subr.bf16.mxu0 %v843_v11 }
  0x43   :  { %829 = vmatpush3.bf16.msra.mxu1 %v828_v5 }
  0x44   :  { %368 = vmatmul.mubr.f32.vlgmr.msra.gmra.mrb[2].mxu0 %v24_v6 }
  0x45   :  { %832 = vmatpush3.bf16.msra.mxu0 %v831_v10  ;;  %699 = vmatprep.mubr.msk.f32.mxu0 %vm844_vm0, %v845_v15 }
  0x46   :  { %438 = vmatmul.mubr.f32.vlgmr.msra.gmra.mrb[2].mxu1 %v26_v7  ;;  %833 = vmatprep.subr.bf16.mxu0 %v843_v11 }
  0x49   :  { %835 = vmatpush3.bf16.msra.mxu0 %v834_v14 }
  0xf7   :  { %v578_v16 = vpop.f32.mrb[0].mxu0 }
  0xf8   :  { %v579_v18 = vpop.f32.mrb[1].mxu0 }
  0xf9   :  { %v613_v19 = vpop.f32.mrb[0].mxu1  ;;  %v580_v20 = vadd.f32 %v579_v18, %v578_v16 }
  0xfa   :  { %v614_v21 = vpop.f32.mrb[1].mxu1 }
  0xfb   :  { %v615_v22 = vadd.f32 %v614_v21, %v613_v19  ;;  %v230_v23 = vadd.f32 %v580_v20, %v543_v17 }
  0xfd   :  { %v300_v24 = vadd.f32 %v615_v22, %v230_v23 }
 0x117   :  { %v648_v25 = vpop.f32.mrb[2].mxu0 }
 0x118   :  { %v649_v26 = vpop.f32.mrb[3].mxu0 }
 0x119   :  { %v683_v27 = vpop.f32.mrb[2].mxu1  ;;  %v650_v28 = vadd.f32 %v649_v26, %v648_v25 }
 0x11a   :  { %v684_v29 = vpop.f32.mrb[3].mxu1 }
 0x11b   :  { %v685_v30 = vadd.f32 %v684_v29, %v683_v27  ;;  %v370_v31 = vadd.f32 %v650_v28, %v300_v24 }
 0x11d   :  { %v440_v32 = vadd.f32 %v685_v30, %v370_v31 }
 0x11f   :  { %v443_v33 = vmax.f32 %v440_v32, 0.0 }
 0x121   :  { %700 = vmatmul.mubr.msk.f32.vlgmr.msra.gmra.mrb[4].mxu0 %vm455_vm1, %v443_v33 }
 0x1f4   :  { %v525_v35 = vpop.f32.mrb[4].mxu0 }
 0x1f5   :  { %v526_v36 = vadd.f32 %v544_v34, %v525_v35  ;;  %v701_v37 = vpop.f32.mrb[5].mxu0 }
 0x1f7   :  { %529 = vmax.xlane.f32.xlu0 %v526_v36 }
 0x284   :  { %v530_v38 = vpop.xlane.xlu0 %529 }
 0x285   :  { %v531_v39 = vsub.f32 %v526_v36, %v530_v38 }
 0x287   :  { %v532_v40 = vmul.f32 1.442695, %v531_v39 }
 0x289   :  { %839 = vpow2.f32 %v532_v40 }
 0x293   :  { %v840_v41 = vpop.eup %839 }
 0x294   :  { %534 = vadd.xlane.f32.xlu0 %v840_v41 }
 0x321   :  { %v535_v42 = vpop.xlane.xlu0 %534 }
 0x322   :  { %841 = vrcp.f32 %v535_v42 }
 0x32c   :  { %v842_v43 = vpop.eup %841 }
 0x32d   :  { %v537_v44 = vmul.f32 %v842_v43, %v840_v41 }
 0x32f   :  { %538 = vst [vmem:[%s1310_s5] sm:$0xff] %v537_v44 }

</bundles_post_ra>
